<compile_context>
chip_gen: v6e
topology: v6e:2x2x1
jax: 0.10.0
libtpu: 0.0.40
codegen_flags: <defaults>
</compile_context>

<pallas_src>
import jax
import jax.numpy as jnp
from jax.experimental import pallas as pl
from jax.experimental.pallas import tpu as pltpu


def _mean_pool_kernel(h_ref, m_ref, o_ref, acc_ref, denom_ref):
    # h_ref: (Bt, St, Ht)   m_ref: (Bt, St, 1)   o_ref: (Bt, Ht)
    s_idx = pl.program_id(2)

    @pl.when(s_idx == 0)
    def _init():
        acc_ref[...] = jnp.zeros_like(acc_ref)
        denom_ref[...] = jnp.zeros_like(denom_ref)

    h = h_ref[...].astype(jnp.float32)            # per-tile cast (keeps HBM narrow)
    m = m_ref[...].astype(jnp.float32)            # mask -> float (matches .float())
    acc_ref[...] += jnp.sum(h * m, axis=1)        # (Bt, Ht) partial masked sum
    denom_ref[...] += jnp.sum(m, axis=1)          # (Bt, 1) partial mask count

    @pl.when(s_idx == pl.num_programs(2) - 1)
    def _finalize():
        denom = jnp.maximum(denom_ref[...], 1e-9)  # clamp(min=1e-9)
        o_ref[...] = (acc_ref[...] / denom).astype(o_ref.dtype)


def _pick_tile(dim, candidates):
    """Largest candidate that evenly divides `dim`, else full extent."""
    for c in candidates:
        if c <= dim and dim % c == 0:
            return c
    return dim


def mean_pooling(last_hidden_state, attention_mask):
    """Masked mean pooling over the sequence axis.

    last_hidden_state: [B, S, H] (any float dtype; accumulation is f32)
    attention_mask:    [B, S]    (int or float)
    returns:           [B, H] float32
    """
    B, S, H = last_hidden_state.shape
    # Put S on the sublane axis of the mask tile (matches the h tile layout).
    mask3 = attention_mask.reshape(B, S, 1)

    # Tile selection: lane-dense Ht (multiple of 128 or full), 128-aligned St
    # (or full S), small Bt. Sized so the double-buffered h tile + f32
    # temporaries fit comfortably under the explicit VMEM limit on all gens
    # (worst case f32: 8 x 256 x 512 x 4B = 4 MiB per buffer).
    bt = 8 if B % 8 == 0 else B
    st = _pick_tile(S, (256, 128))
    ht = _pick_tile(H, (512, 256, 128))

    grid = (B // bt, H // ht, S // st)            # S (reduction) last

    h_itemsize = jnp.dtype(last_hidden_state.dtype).itemsize
    m_itemsize = jnp.dtype(attention_mask.dtype).itemsize
    cost = pl.CostEstimate(
        flops=2 * B * S * H,
        transcendentals=0,
        bytes_accessed=B * S * H * h_itemsize + B * S * m_itemsize + B * H * 4,
    )

    return pl.pallas_call(
        _mean_pool_kernel,
        out_shape=jax.ShapeDtypeStruct((B, H), jnp.float32),
        grid_spec=pltpu.PrefetchScalarGridSpec(
            num_scalar_prefetch=0,
            grid=grid,
            in_specs=[
                pl.BlockSpec((bt, st, ht), lambda b, h, s: (b, s, h)),
                pl.BlockSpec((bt, st, 1), lambda b, h, s: (b, s, 0)),
            ],
            out_specs=pl.BlockSpec((bt, ht), lambda b, h, s: (b, h)),
            scratch_shapes=[
                pltpu.VMEM((bt, ht), jnp.float32),   # masked-sum accumulator
                pltpu.VMEM((bt, 1), jnp.float32),    # mask-count accumulator
            ],
        ),
        compiler_params=pltpu.CompilerParams(
            dimension_semantics=("parallel", "parallel", "arbitrary"),
            vmem_limit_bytes=48 * 1024 * 1024,       # headroom on v7x (64 MiB phys)
        ),
        cost_estimate=cost,
    )(last_hidden_state, mask3)


def mean_pooling_ref(last_hidden_state, attention_mask):
    m = attention_mask.astype(jnp.float32)[:, :, None]
    s = jnp.sum(last_hidden_state.astype(jnp.float32) * m, axis=1)
    d = jnp.maximum(jnp.sum(m, axis=1), 1e-9)
    return s / d


if __name__ == "__main__":
    key = jax.random.PRNGKey(0)
    k1, k2, k3, k4 = jax.random.split(key, 4)

    # --- Small shape consistent with the module (single grid step) ---
    B, S, H = 2, 8, 32
    hs = jax.random.normal(k1, (B, S, H), dtype=jnp.float32)
    mask = (jax.random.uniform(k2, (B, S)) > 0.3).astype(jnp.int32)

    out = mean_pooling(hs, mask)
    jax.block_until_ready(out)
    ref = mean_pooling_ref(hs, mask)
    assert out.shape == (B, H)
    assert jnp.allclose(out, ref, atol=1e-5, rtol=1e-5)

    # --- Tiled shape: exercises the (B, H, S-reduction) grid, bf16 inputs,
    #     multi-step f32 accumulation, and an all-zero mask row (clamp path) ---
    B2, S2, H2 = 8, 512, 384
    hs2 = jax.random.normal(k3, (B2, S2, H2), dtype=jnp.bfloat16)
    mask2 = (jax.random.uniform(k4, (B2, S2)) > 0.3).astype(jnp.int32)
    mask2 = mask2.at[0].set(0)  # fully-masked row -> 0 / 1e-9 ~= 0 like PyTorch

    out2 = mean_pooling(hs2, mask2)
    jax.block_until_ready(out2)
    ref2 = mean_pooling_ref(hs2, mask2)
    assert out2.shape == (B2, H2)
    assert jnp.allclose(out2, ref2, atol=1e-3, rtol=1e-3)

    print("KERNEL_OK")
</pallas_src>

<mosaic_0001>
module attributes {stable_mosaic.version = 11 : i64} {
  func.func @_mean_pool_kernel(%arg0: i32, %arg1: i32, %arg2: i32, %arg3: memref<2x8x32xf32, #tpu.memory_space<vmem>>, %arg4: memref<2x8x1xi32, #tpu.memory_space<vmem>>, %arg5: memref<2x32xf32, #tpu.memory_space<vmem>>, %arg6: memref<2x32xf32, #tpu.memory_space<vmem>>, %arg7: memref<2x1xf32, #tpu.memory_space<vmem>>) attributes {dimension_semantics = [#tpu.dimension_semantics<parallel>, #tpu.dimension_semantics<parallel>, #tpu.dimension_semantics<arbitrary>], iteration_bounds = array<i64: 1, 1, 1>, scalar_prefetch = 0 : i64, scratch_operands = 2 : i64, tpu.core_type = #tpu.core_type<tc>, window_params = [{transform_indices = @transform_0, window_bounds = array<i64: 2, 8, 32>}, {transform_indices = @transform_1, window_bounds = array<i64: 2, 8, 1>}, {transform_indices = @transform_2, window_bounds = array<i64: 2, 32>}]} {
    %c0_i32 = arith.constant 0 : i32
    %0 = arith.cmpi eq, %arg2, %c0_i32 : i32
    %1 = arith.extui %0 : i1 to i32
    %c0_i32_0 = arith.constant 0 : i32
    %2 = arith.cmpi ne, %1, %c0_i32_0 : i32
    scf.if %2 {
      %cst_17 = arith.constant 0.000000e+00 : f32
      %19 = vector.broadcast %cst_17 : f32 to vector<2x32xf32>
      %c0_18 = arith.constant 0 : index
      %c0_19 = arith.constant 0 : index
      %20 = vector.load %arg6[%c0_18, %c0_19] : memref<2x32xf32, #tpu.memory_space<vmem>>, vector<2x32xf32>
      tpu.vector_store %arg6[%c0_18, %c0_19], %19 {strides = array<i32>} : memref<2x32xf32, #tpu.memory_space<vmem>>, vector<2x32xf32>,
      %cst_20 = arith.constant 0.000000e+00 : f32
      %21 = vector.broadcast %cst_20 : f32 to vector<2x1xf32>
      %c0_21 = arith.constant 0 : index
      %c0_22 = arith.constant 0 : index
      %22 = vector.load %arg7[%c0_21, %c0_22] : memref<2x1xf32, #tpu.memory_space<vmem>>, vector<2x1xf32>
      tpu.vector_store %arg7[%c0_21, %c0_22], %21 {strides = array<i32>} : memref<2x1xf32, #tpu.memory_space<vmem>>, vector<2x1xf32>,
    } else {
    }
    %c0 = arith.constant 0 : index
    %c0_1 = arith.constant 0 : index
    %c0_2 = arith.constant 0 : index
    %3 = vector.load %arg3[%c0, %c0_1, %c0_2] : memref<2x8x32xf32, #tpu.memory_space<vmem>>, vector<2x8x32xf32>
    %c0_3 = arith.constant 0 : index
    %c0_4 = arith.constant 0 : index
    %c0_5 = arith.constant 0 : index
    %4 = vector.load %arg4[%c0_3, %c0_4, %c0_5] : memref<2x8x1xi32, #tpu.memory_space<vmem>>, vector<2x8x1xi32>
    %5 = arith.sitofp %4 : vector<2x8x1xi32> to vector<2x8x1xf32>
    %c0_6 = arith.constant 0 : index
    %c0_7 = arith.constant 0 : index
    %6 = vector.load %arg6[%c0_6, %c0_7] : memref<2x32xf32, #tpu.memory_space<vmem>>, vector<2x32xf32>
    %7 = vector.broadcast %5 : vector<2x8x1xf32> to vector<2x8x32xf32>
    %8 = arith.mulf %3, %7 : vector<2x8x32xf32>
    %cst = arith.constant dense<0.000000e+00> : vector<2x32xf32>
    %9 = vector.multi_reduction <add>, %8, %cst [1] : vector<2x8x32xf32> to vector<2x32xf32>
    %10 = arith.addf %6, %9 : vector<2x32xf32>
    %c0_8 = arith.constant 0 : index
    %c0_9 = arith.constant 0 : index
    %11 = vector.load %arg6[%c0_8, %c0_9] : memref<2x32xf32, #tpu.memory_space<vmem>>, vector<2x32xf32>
    tpu.vector_store %arg6[%c0_8, %c0_9], %10 {strides = array<i32>} : memref<2x32xf32, #tpu.memory_space<vmem>>, vector<2x32xf32>,
    %c0_10 = arith.constant 0 : index
    %c0_11 = arith.constant 0 : index
    %12 = vector.load %arg7[%c0_10, %c0_11] : memref<2x1xf32, #tpu.memory_space<vmem>>, vector<2x1xf32>
    %cst_12 = arith.constant dense<0.000000e+00> : vector<2x1xf32>
    %13 = vector.multi_reduction <add>, %5, %cst_12 [1] : vector<2x8x1xf32> to vector<2x1xf32>
    %14 = arith.addf %12, %13 : vector<2x1xf32>
    %c0_13 = arith.constant 0 : index
    %c0_14 = arith.constant 0 : index
    %15 = vector.load %arg7[%c0_13, %c0_14] : memref<2x1xf32, #tpu.memory_space<vmem>>, vector<2x1xf32>
    tpu.vector_store %arg7[%c0_13, %c0_14], %14 {strides = array<i32>} : memref<2x1xf32, #tpu.memory_space<vmem>>, vector<2x1xf32>,
    %c0_i32_15 = arith.constant 0 : i32
    %16 = arith.cmpi eq, %arg2, %c0_i32_15 : i32
    %17 = arith.extui %16 : i1 to i32
    %c0_i32_16 = arith.constant 0 : i32
    %18 = arith.cmpi ne, %17, %c0_i32_16 : i32
    scf.if %18 {
      %c0_17 = arith.constant 0 : index
      %c0_18 = arith.constant 0 : index
      %19 = vector.load %arg7[%c0_17, %c0_18] : memref<2x1xf32, #tpu.memory_space<vmem>>, vector<2x1xf32>
      %cst_19 = arith.constant 9.99999971E-10 : f32
      %20 = vector.broadcast %cst_19 : f32 to vector<2x1xf32>
      %21 = arith.maximumf %19, %20 : vector<2x1xf32>
      %c0_20 = arith.constant 0 : index
      %c0_21 = arith.constant 0 : index
      %22 = vector.load %arg6[%c0_20, %c0_21] : memref<2x32xf32, #tpu.memory_space<vmem>>, vector<2x32xf32>
      %23 = vector.broadcast %21 : vector<2x1xf32> to vector<2x32xf32>
      %24 = arith.divf %22, %23 : vector<2x32xf32>
      %c0_22 = arith.constant 0 : index
      %c0_23 = arith.constant 0 : index
      %25 = vector.load %arg5[%c0_22, %c0_23] : memref<2x32xf32, #tpu.memory_space<vmem>>, vector<2x32xf32>
      tpu.vector_store %arg5[%c0_22, %c0_23], %24 {strides = array<i32>} : memref<2x32xf32, #tpu.memory_space<vmem>>, vector<2x32xf32>,
    } else {
    }
    return
  }
  func.func @transform_0(%arg0: i32, %arg1: i32, %arg2: i32) -> (i32, i32, i32) {
    %c0_i32 = arith.constant 0 : i32
    return %arg0, %arg2, %arg1 : i32, i32, i32
  }
  func.func @transform_1(%arg0: i32, %arg1: i32, %arg2: i32) -> (i32, i32, i32) {
    %c0_i32 = arith.constant 0 : i32
    %c0_i32_0 = arith.constant 0 : i32
    return %arg0, %arg2, %c0_i32 : i32, i32, i32
  }
  func.func @transform_2(%arg0: i32, %arg1: i32, %arg2: i32) -> (i32, i32) {
    %c0_i32 = arith.constant 0 : i32
    return %arg0, %arg1 : i32, i32
  }
}

</mosaic_0001>

<bundles_post_ra>
// kernel: tpu_custom_call.1
= control target key start
LH: loop header
LB: loop body
LE: loop exit
PB: predicated region body
PF: predicated region fallthrough
CT: control target
= control target key end

     0   :  { %vm63_vm0 = vcmask 7168   ;;  %v142_v2 = vmov 0   ;;  %vm18_vm1 = vcmask 1024   ;;  %s182_s0 = inlined_call_operand.vmem [shape: f32[2,8,32], index: 0, kind: input, shape index: {}]   ;;  %s183_s1 = inlined_call_operand.vmem [shape: s32[2,8,1], index: 1, kind: input, shape index: {}]   ;;  %s184_s2 = inlined_call_operand.hbm [shape: f32[2,32], index: 2, kind: output, shape index: {}]  }
   0x1   :  { %v22_v0 = vld [vmem:[%s183_s1] sm:$0xff]  ;;  %v23_v1 = vld [vmem:[%s183_s1 + $0x8] sm:$0xff]  ;;  %116 = vset.pattern.permute.xlu0 %v142_v2  ;;  %117 = vset.pattern.permute.xlu1 %v142_v2 }
   0x2   :  { %v24_v3 = vcvt.s32.f32 %v22_v0  ;;  %v25_v4 = vcvt.s32.f32 %v23_v1 }
   0x3   :  { %7 = vsyncpa [#allocation5], 0  ;;  %v143_v5 = vmov 0.0   ;;  %vm16_vm2 = vcmask 254976   ;;  %vm56_vm3 = vcmask 1041409   ;;  %v20_v25 = vld [vmem:[%s182_s0] sm:$0xff] }
   0x4   :  { %19 = vst.msk [vmem:[#allocation3] sm:$0x3] %vm18_vm1, %v143_v5  ;;  %29 = vperm.xlu0 %116, %v24_v3   ;;  %v64_v6 = vsel %vm63_vm0, %v24_v3, 0.0  ;;  %v71_v7 = vsel %vm63_vm0, %v25_v4, 0.0  ;;  %vm39_vm4 = vcmask 261120   ;;  %v21_v28 = vld [vmem:[%s182_s0 + $0x8] sm:$0xff] }
   0x5   :  { %v65_v8 = vrot.slane %v64_v6, 4  ;;  %v72_v9 = vrot.slane %v71_v7, 4  ;;  %17 = vst.msk [vmem:[#allocation2] sm:$0x3] %vm16_vm2, %v143_v5  ;;  %s144_s0 = smov [#allocation4]  }
   0x6   :  { %s105_s16 = sshll.u32 %s144_s0, 4  ;;  %s106_s16 = int_to_ptr.vmem [resolvable:$true] %s105_s16 }
   0x7   :  { %v66_v10 = vadd.f32 %v65_v8, %v64_v6  ;;  %v73_v11 = vadd.f32 %v72_v9, %v71_v7  ;;  %s120_s17 = scalar_lea.vmem %s106_s16, 32  ;;  %p125_p1 = scmp.lt.s32.totalorder %s106_s16, %s106_s16 }
   0x8   :  { %34 = vperm.xlu0 %116, %v25_v4   ;;  %p121_p0 = scmp.ne.s32.totalorder %s106_s16, %s120_s17  ;;  %p126_p2 = scmp.lt.s32.totalorder %s120_s17, %s120_s17 }
   0x9   :  { %v67_v12 = vrot.slane %v66_v10, 2  ;;  %v74_v13 = vrot.slane %v73_v11, 2 }
   0xa   :  { %p127_p3 = por %p126_p2, %p125_p1 }
   0xb   :  { %v68_v14 = vadd.f32 %v67_v12, %v66_v10  ;;  %v75_v15 = vadd.f32 %v74_v13, %v73_v11  ;;  %v62_v20 = vld [vmem:[#allocation3] sm:$0x3] }
   0xc   :  { %v26_v45 = vld [vmem:[#allocation2] sm:$0x3]  ;;  %p128_p4 = pnand %p127_p3, %p121_p0 }
   0xd   :  { %v69_v16 = vrot.slane %v68_v14, 1  ;;  %v76_v17 = vrot.slane %v75_v15, 1 }
   0xf   :  { %v70_v18 = vadd.f32 %v69_v16, %v68_v14  ;;  %v77_v19 = vadd.f32 %v76_v17, %v75_v15 }
  0x11   :  { %v80_v21 = vsel %vm56_vm3, %v77_v19, %v70_v18 }
  0x12   :  { %v82_v22 = vadd.f32 %v80_v21, %v62_v20 }
  0x14   :  { %84 = vst.msk [vmem:[#allocation3] sm:$0x3] %vm18_vm1, %v82_v22 }
  0x1b   :  { %v88_v23 = vld [vmem:[#allocation3] sm:$0x3] }
  0x1c   :  { %v89_v24 = vmax.f32 %v88_v23, 1e-09 }
  0x1e   :  { %93 = vperm.xlu1 %117, %v89_v24  }
  0x7f   :  { %v30_v26 = vpop.permute.xlu0 %29 }
  0x80   :  { %v37_v27 = vmul.f32 %v30_v26, %v20_v25 }
  0x82   :  { %v40_v29 = vsel %vm39_vm4, %v37_v27, 0.0 }
  0x83   :  { %v41_v30 = vrot.slane %v40_v29, 4  ;;  %v35_v31 = vpop.permute.xlu0 %34 }
  0x84   :  { %v38_v32 = vmul.f32 %v35_v31, %v21_v28 }
  0x85   :  { %v42_v33 = vadd.f32 %v41_v30, %v40_v29 }
  0x86   :  { %v47_v34 = vsel %vm39_vm4, %v38_v32, 0.0 }
  0x87   :  { %v43_v35 = vrot.slane %v42_v33, 2  ;;  %v48_v36 = vrot.slane %v47_v34, 4 }
  0x89   :  { %v44_v37 = vadd.f32 %v43_v35, %v42_v33  ;;  %v49_v38 = vadd.f32 %v48_v36, %v47_v34 }
  0x8b   :  { %v45_v39 = vrot.slane %v44_v37, 1  ;;  %v50_v40 = vrot.slane %v49_v38, 2 }
  0x8d   :  { %v51_v41 = vadd.f32 %v50_v40, %v49_v38  ;;  %v46_v42 = vadd.f32 %v45_v39, %v44_v37 }
  0x8f   :  { %v52_v43 = vrot.slane %v51_v41, 1 }
  0x91   :  { %v53_v44 = vadd.f32 %v52_v43, %v51_v41 }
  0x93   :  { %v57_v46 = vsel %vm56_vm3, %v53_v44, %v46_v42 }
  0x94   :  { %v59_v47 = vadd.f32 %v57_v46, %v26_v45 }
  0x96   :  { %61 = vst.msk [vmem:[#allocation2] sm:$0x3] %vm16_vm2, %v59_v47 }
  0x99   :  { %v94_v48 = vpop.permute.xlu1 %93 }
  0x9a   :  { %118 = vrcp.f32 %v94_v48 }
  0x9d   :  { %v90_v50 = vld [vmem:[#allocation2] sm:$0x3] }
  0xa7   :  { %v119_v49 = vpop.eup %118 }
  0xa8   :  { %v97_v51 = vmul.f32 %v119_v49, %v90_v50 }
  0xaa   :  { %98 = vst.msk [vmem:[#allocation4] sm:$0x3] %vm16_vm2, %v97_v51 }
  0xab   :  { %131 = shalt.err (!%p128_p4)
}
  0xac   :  { %108 = dma.vmem_to_hbm [thread:$0]  %s106_s16, 32, %s184_s2, [#allocation5]  }
  0xad   :  { %140 = dma.done.wait [#allocation5], 32  }
  0xae   :  { %141 = vsyncadd [#allocation5], 4294967264 }
  0xaf   :  { %112 = vsyncpa [#allocation5], 1 }

</bundles_post_ra>
